<compile_context>
chip_gen: v7x
topology: tpu7x:2x2x1
jax: 0.10.0
libtpu: 0.0.40
codegen_flags: <defaults>
</compile_context>

<pallas_src>
import functools

import jax
import jax.numpy as jnp
from jax.experimental import pallas as pl
from jax.experimental.pallas import tpu as pltpu


# --------------------------------------------------------------------------- #
# helpers
# --------------------------------------------------------------------------- #
def _round_up(v, m):
    return ((v + m - 1) // m) * m


def _vmem_cap():
    """Physical VMEM per core (bytes); conservative 64 MiB fallback (v7x)."""
    try:
        return int(pltpu.get_tpu_info().vmem_capacity_bytes)
    except Exception:
        return 64 << 20


def _clamp_vmem(need_bytes, cap):
    """Requested scoped-VMEM limit: need + margin, floored, never above HW."""
    want = int(need_bytes * 1.25) + (2 << 20)
    return int(min(cap, max(32 << 20, want)))


def _pad_feature(f):
    # Full-extent blocks are exempt from the 128-lane rule, so only pad when
    # the feature dim is big enough that 256-alignment (full 256x256 MXU tiles
    # on v6e/v7x, lane-dense stores) pays for the extra zeros.
    return f if f <= 128 else _round_up(f, 256)


def _plan_node_tiling(n, tm_cap, tk_cap):
    """Return (padded N, row tile TM, contraction tile TK)."""
    if n <= tm_cap:
        return n, n, n                      # single block per batch, no padding
    np_ = _round_up(n, 256)
    tm = tm_cap if np_ % tm_cap == 0 else 256
    tk = 256
    for cand in (2048, 1024, 768, 512):
        if cand <= tk_cap and np_ % cand == 0:
            tk = cand
            break
    return np_, tm, tk


def _pad_to(a, shape):
    pads = [(0, t - s) for s, t in zip(a.shape, shape)]
    if any(p for _, p in pads):
        a = jnp.pad(a, pads)
    return a


# --------------------------------------------------------------------------- #
# kernels
# --------------------------------------------------------------------------- #
def _transform_kernel(x_ref, w_ref, b_ref, o_ref, *, epilogue):
    # x_ref: (TM, Fin)   w_ref: (Fin, Fout)  [pre-transposed, resident]
    # b_ref: (1, Fout) f32    o_ref: (TM, Fout)
    y = jnp.dot(x_ref[...], w_ref[...], preferred_element_type=jnp.float32)
    if epilogue:                            # fused bias + relu (static flag)
        y = jnp.maximum(y + b_ref[...], 0.0)
    o_ref[...] = y.astype(o_ref.dtype)


def _aggregate_kernel(adj_ref, h_ref, b_ref, o_ref, acc_ref, *, epilogue):
    # adj_ref: (TM, TK)   h_ref: (TK, F)   acc_ref: (TM, F) f32 scratch
    k = pl.program_id(2)
    prod = jnp.dot(adj_ref[...], h_ref[...], preferred_element_type=jnp.float32)

    @pl.when(k == 0)                        # no zero-fill: write first product
    def _init():
        acc_ref[...] = prod

    @pl.when(k > 0)
    def _accumulate():
        acc_ref[...] += prod

    @pl.when(k == pl.num_programs(2) - 1)
    def _finalize():
        y = acc_ref[...]
        if epilogue:
            y = jnp.maximum(y + b_ref[...], 0.0)
        o_ref[...] = y.astype(o_ref.dtype)


# --------------------------------------------------------------------------- #
# pallas_call wrappers
# --------------------------------------------------------------------------- #
def _transform(x3, w2, b2, *, tm, epilogue, out_dtype, vmem_cap):
    """(B, Np, Fin) @ (Fin, Fout) [+ bias, relu] -> (B, Np, Fout)."""
    B, Np, fin = x3.shape
    fout = w2.shape[1]
    need = (2 * tm * fin * x3.dtype.itemsize            # x tiles (2x buffered)
            + 2 * fin * fout * w2.dtype.itemsize        # weight (grid-invariant,
            #   still double-buffered by default)        #  TODO(synk): Buffered(1) on v7x
            + 2 * b2.size * b2.dtype.itemsize            # bias
            + 2 * tm * fout * jnp.dtype(out_dtype).itemsize)  # output tiles

    kernel = functools.partial(_transform_kernel, epilogue=epilogue)
    return pl.pallas_call(
        kernel,
        out_shape=jax.ShapeDtypeStruct((B, Np, fout), out_dtype),
        grid_spec=pltpu.PrefetchScalarGridSpec(
            num_scalar_prefetch=0,
            grid=(B, Np // tm),
            in_specs=[
                pl.BlockSpec((pl.Squeezed(), tm, fin), lambda b, i: (b, i, 0)),
                pl.BlockSpec((fin, fout), lambda b, i: (0, 0)),
                pl.BlockSpec((1, fout), lambda b, i: (0, 0)),
            ],
            out_specs=pl.BlockSpec((pl.Squeezed(), tm, fout),
                                   lambda b, i: (b, i, 0)),
        ),
        compiler_params=pltpu.CompilerParams(
            dimension_semantics=("parallel", "parallel"),
            vmem_limit_bytes=_clamp_vmem(need, vmem_cap),
        ),
    )(x3, w2, b2)


def _aggregate(adj3, h3, b2, *, tm, tk, epilogue, out_dtype, vmem_cap):
    """(B, Np, Np) @ (B, Np, F) [+ bias, relu] -> (B, Np, F), K-tiled."""
    B, Np, _ = adj3.shape
    feat = h3.shape[2]
    need = (2 * tm * tk * adj3.dtype.itemsize            # adj tiles
            + 2 * tk * feat * h3.dtype.itemsize          # h tiles
            + 2 * b2.size * b2.dtype.itemsize            # bias
            + 2 * tm * feat * jnp.dtype(out_dtype).itemsize   # output tiles
            + tm * feat * 4)                             # f32 accumulator

    kernel = functools.partial(_aggregate_kernel, epilogue=epilogue)
    return pl.pallas_call(
        kernel,
        out_shape=jax.ShapeDtypeStruct((B, Np, feat), out_dtype),
        grid_spec=pltpu.PrefetchScalarGridSpec(
            num_scalar_prefetch=0,
            grid=(B, Np // tm, Np // tk),
            in_specs=[
                pl.BlockSpec((pl.Squeezed(), tm, tk), lambda b, i, k: (b, i, k)),
                pl.BlockSpec((pl.Squeezed(), tk, feat), lambda b, i, k: (b, k, 0)),
                pl.BlockSpec((1, b2.shape[1]), lambda b, i, k: (0, 0)),
            ],
            out_specs=pl.BlockSpec((pl.Squeezed(), tm, feat),
                                   lambda b, i, k: (b, i, 0)),
            scratch_shapes=[pltpu.VMEM((tm, feat), jnp.float32)],
        ),
        compiler_params=pltpu.CompilerParams(
            dimension_semantics=("parallel", "parallel", "arbitrary"),
            vmem_limit_bytes=_clamp_vmem(need, vmem_cap),
        ),
    )(adj3, h3, b2)


# --------------------------------------------------------------------------- #
# GCN layer
# --------------------------------------------------------------------------- #
def gcn_layer(x, adj, weight, bias, *, compute_dtype=jnp.bfloat16):
    """relu(Linear(adj @ x)): x [B,N,Fin], adj [B,N,N], weight [Fout,Fin], bias [Fout]."""
    B, N, Fin = x.shape
    Fout = weight.shape[0]
    out_dtype = x.dtype
    cd = jnp.dtype(compute_dtype)

    cap = _vmem_cap()
    big_vmem = cap >= (96 << 20)             # v5e / v6e: 128 MiB; v7x: 64 MiB
    Np, TM, TK = _plan_node_tiling(N,
                                   512 if big_vmem else 256,
                                   2048 if big_vmem else 1024)
    Fin_p, Fout_p = _pad_feature(Fin), _pad_feature(Fout)

    adj_p = _pad_to(adj, (B, Np, Np)).astype(cd)
    x_p = _pad_to(x, (B, Np, Fin_p)).astype(cd)
    w_t = _pad_to(weight.T, (Fin_p, Fout_p)).astype(cd)   # pre-transposed once
    b_p = _pad_to(bias, (Fout_p,)).reshape(1, Fout_p).astype(jnp.float32)

    # relu((adj @ x) @ W^T + b) == relu(adj @ (x @ W^T) + b): pick the order
    # that keeps the smaller feature dim in the K-accumulated aggregate stage.
    if Fout_p <= Fin_p:
        # project first, then aggregate (bias + relu fused into aggregate)
        h = _transform(x_p, w_t, b_p, tm=TM, epilogue=False,
                       out_dtype=cd, vmem_cap=cap)
        out_p = _aggregate(adj_p, h, b_p, tm=TM, tk=TK, epilogue=True,
                           out_dtype=out_dtype, vmem_cap=cap)
    else:
        # aggregate first, then project (bias + relu fused into transform)
        h = _aggregate(adj_p, x_p, b_p, tm=TM, tk=TK, epilogue=False,
                       out_dtype=cd, vmem_cap=cap)
        out_p = _transform(h, w_t, b_p, tm=TM, epilogue=True,
                           out_dtype=out_dtype, vmem_cap=cap)

    return out_p[:, :N, :Fout]


def gcn_reference(x, adj, weight, bias):
    h = jnp.einsum("bij,bjf->bif", adj, x)
    y = jnp.einsum("bif,of->bio", h, weight) + bias
    return jnp.maximum(y, 0.0)


# --------------------------------------------------------------------------- #
# test
# --------------------------------------------------------------------------- #
if __name__ == "__main__":
    def make_case(key, B, N, Fin, Fout):
        kx, ka, kw, kb = jax.random.split(key, 4)
        x = jax.random.normal(kx, (B, N, Fin), dtype=jnp.float32)
        adj = jax.random.uniform(ka, (B, N, N), dtype=jnp.float32)
        bound = 1.0 / (Fin ** 0.5)           # nn.Linear-style init
        w = jax.random.uniform(kw, (Fout, Fin), minval=-bound, maxval=bound,
                               dtype=jnp.float32)
        b = jax.random.uniform(kb, (Fout,), minval=-bound, maxval=bound,
                               dtype=jnp.float32)
        return x, adj, w, b

    key = jax.random.PRNGKey(0)
    k1, k2 = jax.random.split(key)
    # (B, N, Fin, Fout): first exercises aggregate-then-project (Fout > Fin),
    # second exercises project-then-aggregate (Fin > Fout).
    cases = [(2, 16, 16, 32), (2, 16, 32, 16)]

    for case_key, (B, N, Fin, Fout) in zip((k1, k2), cases):
        x, adj, w, b = make_case(case_key, B, N, Fin, Fout)
        ref = gcn_reference(x, adj, w, b)

        # f32 operands: tight check against the f32 reference.
        out32 = jax.block_until_ready(
            gcn_layer(x, adj, w, b, compute_dtype=jnp.float32))
        assert out32.shape == (B, N, Fout)
        assert jnp.allclose(out32, ref, atol=1e-4, rtol=1e-4)

        # bf16 MXU operands (default): compare against a reference fed the same
        # bf16-quantized operands so the check isolates kernel correctness from
        # quantization error.
        out_bf = jax.block_until_ready(gcn_layer(x, adj, w, b))
        q = lambda a: a.astype(jnp.bfloat16).astype(jnp.float32)
        ref_q = gcn_reference(q(x), q(adj), q(w), b)
        assert out_bf.shape == (B, N, Fout)
        assert jnp.allclose(out_bf, ref_q, atol=3e-2, rtol=3e-2)

    print("KERNEL_OK")
</pallas_src>

<mosaic_0001>
module attributes {stable_mosaic.version = 11 : i64} {
  func.func @_aggregate_kernel(%arg0: i32, %arg1: i32, %arg2: i32, %arg3: memref<1x16x16xf32, #tpu.memory_space<vmem>>, %arg4: memref<1x16x16xf32, #tpu.memory_space<vmem>>, %arg5: memref<1x32xf32, #tpu.memory_space<vmem>>, %arg6: memref<1x16x16xf32, #tpu.memory_space<vmem>>, %arg7: memref<16x16xf32, #tpu.memory_space<vmem>>) attributes {dimension_semantics = [#tpu.dimension_semantics<parallel>, #tpu.dimension_semantics<parallel>, #tpu.dimension_semantics<arbitrary>], iteration_bounds = array<i64: 2, 1, 1>, scalar_prefetch = 0 : i64, scratch_operands = 1 : i64, tpu.core_type = #tpu.core_type<tc>, window_params = [{transform_indices = @transform_0, window_bounds = array<i64: 1, 16, 16>}, {transform_indices = @transform_1, window_bounds = array<i64: 1, 16, 16>}, {pipeline_mode = #tpu.pipeline_mode<synchronous>, transform_indices = @transform_2, window_bounds = array<i64: 1, 32>}, {transform_indices = @transform_3, window_bounds = array<i64: 1, 16, 16>}]} {
    %c0 = arith.constant 0 : index
    %c0_0 = arith.constant 0 : index
    %c0_1 = arith.constant 0 : index
    %0 = vector.load %arg3[%c0, %c0_0, %c0_1] : memref<1x16x16xf32, #tpu.memory_space<vmem>>, vector<1x16x16xf32>
    %1 = vector.shape_cast %0 : vector<1x16x16xf32> to vector<16x16xf32>
    %c0_2 = arith.constant 0 : index
    %c0_3 = arith.constant 0 : index
    %c0_4 = arith.constant 0 : index
    %2 = vector.load %arg4[%c0_2, %c0_3, %c0_4] : memref<1x16x16xf32, #tpu.memory_space<vmem>>, vector<1x16x16xf32>
    %3 = vector.shape_cast %2 : vector<1x16x16xf32> to vector<16x16xf32>
    %cst = arith.constant dense<0.000000e+00> : vector<16x16xf32>
    %4 = tpu.matmul %1, %3, %cst {dimension_numbers = #tpu.dot_dimension_numbers<[1], [0], [0], [1], [0, 0, 1, 1], [], []>} : vector<16x16xf32>, vector<16x16xf32>, vector<16x16xf32> -> vector<16x16xf32>
    %c0_i32 = arith.constant 0 : i32
    %5 = arith.cmpi eq, %arg2, %c0_i32 : i32
    %6 = arith.extui %5 : i1 to i32
    %c0_i32_5 = arith.constant 0 : i32
    %7 = arith.cmpi ne, %6, %c0_i32_5 : i32
    scf.if %7 {
      %c0_10 = arith.constant 0 : index
      %c0_11 = arith.constant 0 : index
      %14 = vector.load %arg7[%c0_10, %c0_11] : memref<16x16xf32, #tpu.memory_space<vmem>>, vector<16x16xf32>
      tpu.vector_store %arg7[%c0_10, %c0_11], %4 {strides = array<i32>} : memref<16x16xf32, #tpu.memory_space<vmem>>, vector<16x16xf32>,
    } else {
    }
    %c0_i32_6 = arith.constant 0 : i32
    %8 = arith.cmpi sgt, %arg2, %c0_i32_6 : i32
    %9 = arith.extui %8 : i1 to i32
    %c0_i32_7 = arith.constant 0 : i32
    %10 = arith.cmpi ne, %9, %c0_i32_7 : i32
    scf.if %10 {
      %c0_10 = arith.constant 0 : index
      %c0_11 = arith.constant 0 : index
      %14 = vector.load %arg7[%c0_10, %c0_11] : memref<16x16xf32, #tpu.memory_space<vmem>>, vector<16x16xf32>
      %15 = arith.addf %14, %4 : vector<16x16xf32>
      %c0_12 = arith.constant 0 : index
      %c0_13 = arith.constant 0 : index
      %16 = vector.load %arg7[%c0_12, %c0_13] : memref<16x16xf32, #tpu.memory_space<vmem>>, vector<16x16xf32>
      tpu.vector_store %arg7[%c0_12, %c0_13], %15 {strides = array<i32>} : memref<16x16xf32, #tpu.memory_space<vmem>>, vector<16x16xf32>,
    } else {
    }
    %c0_i32_8 = arith.constant 0 : i32
    %11 = arith.cmpi eq, %arg2, %c0_i32_8 : i32
    %12 = arith.extui %11 : i1 to i32
    %c0_i32_9 = arith.constant 0 : i32
    %13 = arith.cmpi ne, %12, %c0_i32_9 : i32
    scf.if %13 {
      %c0_10 = arith.constant 0 : index
      %c0_11 = arith.constant 0 : index
      %14 = vector.load %arg7[%c0_10, %c0_11] : memref<16x16xf32, #tpu.memory_space<vmem>>, vector<16x16xf32>
      %c0_12 = arith.constant 0 : index
      %c0_13 = arith.constant 0 : index
      %c0_14 = arith.constant 0 : index
      %15 = vector.load %arg6[%c0_12, %c0_13, %c0_14] : memref<1x16x16xf32, #tpu.memory_space<vmem>>, vector<1x16x16xf32>
      %16 = vector.shape_cast %15 : vector<1x16x16xf32> to vector<16x16xf32>
      %17 = vector.shape_cast %14 : vector<16x16xf32> to vector<1x16x16xf32>
      tpu.vector_store %arg6[%c0_12, %c0_13, %c0_14], %17 {strides = array<i32>} : memref<1x16x16xf32, #tpu.memory_space<vmem>>, vector<1x16x16xf32>,
    } else {
    }
    return
  }
  func.func @transform_0(%arg0: i32, %arg1: i32, %arg2: i32) -> (i32, i32, i32) {
    %c0_i32 = arith.constant 0 : i32
    return %arg0, %arg1, %arg2 : i32, i32, i32
  }
  func.func @transform_1(%arg0: i32, %arg1: i32, %arg2: i32) -> (i32, i32, i32) {
    %c0_i32 = arith.constant 0 : i32
    %c0_i32_0 = arith.constant 0 : i32
    return %arg0, %arg2, %c0_i32 : i32, i32, i32
  }
  func.func @transform_2(%arg0: i32, %arg1: i32, %arg2: i32) -> (i32, i32) {
    %c0_i32 = arith.constant 0 : i32
    %c0_i32_0 = arith.constant 0 : i32
    %c0_i32_1 = arith.constant 0 : i32
    return %c0_i32, %c0_i32_0 : i32, i32
  }
  func.func @transform_3(%arg0: i32, %arg1: i32, %arg2: i32) -> (i32, i32, i32) {
    %c0_i32 = arith.constant 0 : i32
    %c0_i32_0 = arith.constant 0 : i32
    return %arg0, %arg1, %c0_i32 : i32, i32, i32
  }
}

</mosaic_0001>

<bundles_post_ra>
// kernel: tpu_custom_call.1
= control target key start
LH: loop header
LB: loop body
LE: loop exit
PB: predicated region body
PF: predicated region fallthrough
CT: control target
= control target key end

     0   :  { %8 = vsyncpa [#allocation4], 0  ;;  %s1033_s0 = inlined_call_operand.hbm [shape: f32[2,16,16], index: 0, kind: input, shape index: {}]   ;;  %s1034_s1 = inlined_call_operand.hbm [shape: f32[2,16,16], index: 1, kind: input, shape index: {}]   ;;  %s1035_s2 = inlined_call_operand.vmem [shape: f32[1,32], index: 2, kind: input, shape index: {}]   ;;  %s1036_s3 = inlined_call_operand.hbm [shape: f32[2,16,16], index: 3, kind: output, shape index: {}]  }
   0x1   :  { %10 = vsyncpa [#allocation4 + $0x1], 0 }
   0x2   :  { %11 = vsyncpa [#allocation7], 0 }
   0x3   :  { %13 = vsyncpa [#allocation7 + $0x1], 0 }
   0x4   :  { %14 = vsyncpa [#allocation5], 0 }
   0x5   :  { %16 = vsyncpa [#allocation5 + $0x1], 0  ;;  %s791_s12 = smov 0   ;;  %s793_s13 = smov 0  }
   0x6   :  { %s795_s14 = smov 0   ;;  %s797_s15 = smov 0  }
   0x7   :  { %s799_s16 = smov 0   ;;  %s801_s2 = smov 0  }
   0x8 LB: > { %s506_s17 = sadd.s32 4294967295, %s762_s2   ;;  %s507_s18 = sadd.s32 4294967294, %s762_s2   ;;  %s762_s2 = sphi %s801_s2, %s22_s2   ;;  %s758_s16 = sphi %s799_s16, %s1054_s16   ;;  %s754_s15 = sphi %s797_s15, %s1053_s15   ;;  %s750_s14 = sphi %s795_s14, %s1052_s14   ;;  %s746_s13 = sphi %s793_s13, %s1051_s13   ;;  %s742_s12 = sphi %s791_s12, %s1050_s12  }
   0x9   : > { %s41_s19 = sadd.s32 1, %s758_s16  ;;  %s52_s20 = sadd.s32 1, %s750_s14 }
   0xa   : > { %p43_p0 = scmp.ge.s32.totalorder %s41_s19, 2  ;;  %p59_p1 = scmp.ne.s32.totalorder %s750_s14, %s746_s13 }
   0xb   : > { %p60_p2 = scmp.eq.s32.totalorder %s762_s2, 0  ;;  %p65_p3 = scmp.ne.s32.totalorder %s746_s13, %s742_s12 }
   0xc   : > { %s1056_s19 = smov (%p43_p0, %s41_s19), 0  ;;  %p66_p5 = scmp.eq.s32.totalorder %s506_s17, 0 }
   0xd   : > { %p832_p4 = por %p60_p2, %p59_p1  ;;  %s45_s22 = ssub.s32 %s758_s16, %s1056_s19 }
   0xe   : > { %p140_p6 = scmp.eq.s32.totalorder %s506_s17, 1  ;;  %p50_p7 = scmp.eq.s32.totalorder %s45_s22, 0 }
   0xf   : > { %p838_p8 = por %p66_p5, %p65_p3  ;;  %p146_p10 = scmp.eq.s32.totalorder %s507_s18, 1 }
  0x10   : > { %p842_p9 = por %p140_p6, %p59_p1  ;;  %p562_p13 = scmp.lt.s32.totalorder %s762_s2, 2 }
  0x11   : > { %s1040_s23 = scalar_select %p838_p8, 1, 0 }
  0x12   : > { %s1041_s24 = scalar_select %p842_p9, 1, 0 }
  0x13   : > { %s847_s25 = scalar_select %p50_p7, %s750_s14, %s52_s20  }
  0x14   : > { %p849_p11 = por %p146_p10, %p65_p3  ;;  %s856_s27 = sand.u32 1, %s750_s14  }
  0x15   : > { %s510_s28 = sshll.u32 %s856_s27, 4  ;;  %s527_s29 = sshll.u32 %s758_s16, 8 }
  0x16   : > { %s1042_s26 = scalar_select %p849_p11, 1, 0 }
  0x17   : > { %s865_s5 = scalar_lea.hbm %s1033_s0, %s527_s29  ;;  %s173_s6 = scalar_lea.vmem [#allocation3], %s510_s28 }
  0x18   : > { %s183_s7 = sshll.u32 %s173_s6, 4  ;;  %p873_p0 = pnand %p562_p13, %p832_p4  ;;  %s869_s7 = int_to_ptr.vmem [resolvable:$true] %s183_s7 }
  0x19   : > { %s170_s9 = scalar_lea.sflag [#allocation4], %s856_s27  ;;  %s616_s10 = scalar_lea.hbm %s865_s5, 256 }
  0x1a   : > { %p617_p2 = scmp.ne.s32.totalorder %s865_s5, %s616_s10  ;;  %p618_p3 = pneg %p873_p0 }
  0x1b   : > { %s621_s18 = scalar_lea.hbm %s1033_s0, 512  ;;  %p622_p4 = scmp.lt.u32.totalorder %s865_s5, %s1033_s0 }
  0x1c   : > { %p619_p5 = pnand %p618_p3, %p617_p2  ;;  %p623_p7 = scmp.lt.u32.totalorder %s621_s18, %s616_s10 }
  0x1d   : > { %p625_p13 = scmp.lt.u32.totalorder %s616_s10, %s865_s5 }
  0x1e   : > { %p620_p6 = pneg %p619_p5  ;;  %p624_p10 = por %p623_p7, %p622_p4 }
  0x20   : > { %p626_p12 = por %p625_p13, %p624_p10 }
  0x22   : > { %p627_p1 = pnand %p626_p12, %p620_p6 }
  0x24   : > { %630 = shalt.err (!%p627_p1)
}
  0x25   : > { %s631_s22 = scalar_lea.vmem %s869_s7, 256  ;;  %s764_s30 = smov [#allocation3]  }
  0x26   : > { %p632_p2 = scmp.ne.s32.totalorder %s869_s7, %s631_s22  ;;  %s636_s4 = sshll.u32 %s764_s30, 4  ;;  %s637_s4 = int_to_ptr.vmem [resolvable:$false] %s636_s4 }
  0x27   : > { %s638_s6 = scalar_lea.vmem %s637_s4, 512  ;;  %p639_p9 = scmp.lt.s32.totalorder %s869_s7, %s637_s4 }
  0x28   : > { %p634_p5 = pnand %p632_p2, %p618_p3  ;;  %p640_p4 = scmp.lt.s32.totalorder %s638_s6, %s631_s22 }
  0x2a   : > { %p635_p11 = pneg %p634_p5  ;;  %p641_p7 = por %p640_p4, %p639_p9 }
  0x2c   : > { %p642_p10 = pnand %p641_p7, %p635_p11 }
  0x2e   : > { %645 = shalt.err (!%p642_p10)
}
  0x2f   : > { %s765_s10 = smov 128   ;;  %s766_s11 = smov 8  }
  0x30   : > { %554 = dma.hbm_to_vmem [thread:$0]  (!%p873_p0), %s865_s5, 256, %s869_s7, %s170_s9, %s765_s10, %s765_s10, %s766_s11  }
  0x31   : > { %p214_p9 = scmp.lt.s32.totalorder %s762_s2, 3  ;;  %s915_s20 = scalar_lea.hbm %s1034_s1, %s527_s29 }
  0x32   : > { %p1044_p11 = scmp.ge.s32.totalorder %s762_s2, 1  ;;  %s197_s22 = scalar_lea.vmem [#allocation6], %s510_s28 }
  0x33   : > { %s206_s30 = sshll.u32 %s197_s22, 4  ;;  %s194_s5 = scalar_lea.sflag [#allocation7], %s856_s27  ;;  %s925_s30 = int_to_ptr.vmem [resolvable:$true] %s206_s30 }
  0x34   : > { %p919_p12 = pnand %p1044_p11, %p214_p9  ;;  %s646_s7 = scalar_lea.hbm %s915_s20, 256 }
  0x35   : > { %p647_p1 = scmp.ne.s32.totalorder %s915_s20, %s646_s7  ;;  %s651_s4 = scalar_lea.hbm %s1034_s1, 512 }
  0x36   : > { %p652_p2 = scmp.lt.u32.totalorder %s915_s20, %s1034_s1  ;;  %p653_p5 = scmp.lt.u32.totalorder %s651_s4, %s646_s7 }
  0x37   : > { %p649_p6 = pnand %p647_p1, %p618_p3  ;;  %p655_p7 = scmp.lt.u32.totalorder %s646_s7, %s915_s20 }
  0x38   : > { %p654_p4 = por %p653_p5, %p652_p2 }
  0x39   : > { %p650_p13 = pneg %p649_p6 }
  0x3a   : > { %p656_p10 = por %p655_p7, %p654_p4 }
  0x3c   : > { %p657_p9 = pnand %p656_p10, %p650_p13 }
  0x3e   : > { %660 = shalt.err (!%p657_p9)
}
  0x3f   : > { %s661_s28 = scalar_lea.vmem %s925_s30, 256  ;;  %s767_s18 = smov [#allocation6]  }
  0x40   : > { %p662_p11 = scmp.ne.s32.totalorder %s925_s30, %s661_s28  ;;  %s666_s22 = sshll.u32 %s767_s18, 4  ;;  %s667_s22 = int_to_ptr.vmem [resolvable:$false] %s666_s22 }
  0x41   : > { %s668_s29 = scalar_lea.vmem %s667_s22, 512  ;;  %p669_p8 = scmp.lt.s32.totalorder %s925_s30, %s667_s22 }
  0x42   : > { %p664_p1 = pnand %p662_p11, %p618_p3  ;;  %p670_p2 = scmp.lt.s32.totalorder %s668_s29, %s661_s28 }
  0x44   : > { %p665_p6 = pneg %p664_p1  ;;  %p671_p5 = por %p670_p2, %p669_p8 }
  0x46   : > { %p672_p4 = pnand %p671_p5, %p665_p6 }
  0x48   : > { %675 = shalt.err (!%p672_p4)
}
  0x49   : > { %557 = dma.hbm_to_vmem [thread:$0]  (!%p873_p0), %s915_s20, 256, %s925_s30, %s194_s5, %s765_s10, %s765_s10, %s766_s11  }
  0x4a   : > { %218 = sbr.rel (%p919_p12) target bundleno = 327 (0x147), region = 32  ;;  %s959_s7 = sand.u32 (!%p919_p12), 1, %s746_s13  }
  0x4b   : > { %s517_s9 = sshll.u32 (!%p919_p12), %s959_s7, 4  ;;  %s221_s4 = scalar_lea.sflag (!%p919_p12), [#allocation4], %s959_s7 }
  0x4c   : > { %s224_s8 = scalar_lea.vmem (!%p919_p12), [#allocation3], %s517_s9  ;;  %p1046_p8 = scmp.ne.s32.totalorder (!%p919_p12), %s1040_s23, 0 }
  0x51   : > { %729 = dma.done.wait (%p1046_p8), %s221_s4, 256  }
  0x52   : > { %731 = vsyncadd (%p1046_p8), %s221_s4, 4294967040  ;;  %s230_s27 = scalar_lea.sflag [#allocation7], %s959_s7  ;;  %s233_s10 = scalar_lea.vmem [#allocation6], %s517_s9 }
  0x53   : > { %733 = dma.done.wait (%p1046_p8), %s230_s27, 256  }
  0x54   : > { %735 = vsyncadd (%p1046_p8), %s230_s27, 4294967040  ;;  %vm268_vm0 = vcmask 130048   ;;  %v266_v0 = vld [vmem:[%s233_s10] sm:$0xff]  ;;  %v267_v1 = vld [vmem:[%s233_s10 + $0x8] sm:$0xff]  ;;  %s529_s23 = sshll.u32 %s754_s15, 8  ;;  %s260_s11 = scalar_lea.vmem [#allocation8], %s517_s9 }
  0x55   : > { %v264_v2 = vld [vmem:[%s224_s8] sm:$0xff]  ;;  %v541_v3 = vpack.c.bf16 %v267_v1, %v266_v0  ;;  %v265_v4 = vld [vmem:[%s224_s8 + $0x8] sm:$0xff]  ;;  %s389_s20 = sshll.u32 %s260_s11, 4  ;;  %s980_s5 = scalar_lea.hbm %s1036_s3, %s529_s23  ;;  %s982_s20 = int_to_ptr.vmem [resolvable:$true] %s389_s20 }
  0x56   : > { %538 = vmatprep.mubr.msk.f32.mxu0 %vm268_vm0, %v264_v2  ;;  %s374_s6 = scalar_lea.sflag [#allocation5], %s959_s7  ;;  %s676_s15 = scalar_lea.vmem %s982_s20, 256 }
  0x57   : > { %542 = vmatprep.subr.bf16.mxu0 %v541_v3  ;;  %p677_p0 = scmp.ne.s32.totalorder %s982_s20, %s676_s15  ;;  %p1047_p3 = scmp.ne.s32.totalorder %s1041_s24, 0 }
  0x58   : > { %544 = vmatpush3.bf16.msra.mxu0 %v541_v3  ;;  %s768_s17 = smov [#allocation8]  }
  0x59   : > { %p678_p12 = pnand %p677_p0, %p1047_p3  ;;  %s680_s28 = sshll.u32 %s768_s17, 4  ;;  %s681_s28 = int_to_ptr.vmem [resolvable:$false] %s680_s28 }
  0x5a   : > { %s682_s18 = scalar_lea.vmem %s681_s28, 512  ;;  %p683_p7 = scmp.lt.s32.totalorder %s982_s20, %s681_s28 }
  0x5b   : > { %539 = vmatmul.mubr.msk.f32.vlgmr.msra.gmra.mrb[0].mxu0 %vm268_vm0, %v265_v4  ;;  %p679_p13 = pneg %p678_p12  ;;  %p684_p10 = scmp.lt.s32.totalorder %s682_s18, %s676_s15 }
  0x5d   : > { %p685_p9 = por %p684_p10, %p683_p7 }
  0x5f   : > { %p686_p11 = pnand %p685_p9, %p679_p13 }
 0x12e   : > { %v540_v5 = vpop.f32.mrb[0].mxu0 }
 0x12f   : > { %355 = vst.msk [vmem:[#allocation2 + $0x8] sm:$0xff] %vm268_vm0, %v540_v5  ;;  %v341_v6 = vpop.f32.mrb[1].mxu0 }
 0x130   : > { %354 = vst.msk [vmem:[#allocation2] sm:$0xff] %vm268_vm0, %v341_v6 }
 0x136   : > { %v370_v7 = vld [vmem:[#allocation2 + $0x8] sm:$0xff] }
 0x137   : > { %v369_v8 = vld [vmem:[#allocation2] sm:$0xff]  ;;  %372 = vst.msk [vmem:[%s260_s11 + $0x8] sm:$0xff] %vm268_vm0, %v370_v7 }
 0x138   : > { %371 = vst.msk [vmem:[%s260_s11] sm:$0xff] %vm268_vm0, %v369_v8 }
 0x139   : > { %689 = shalt.err (!%p686_p11)
}
 0x13a   : > { %s690_s22 = scalar_lea.hbm %s980_s5, 256  ;;  %s694_s4 = scalar_lea.hbm %s1036_s3, 512 }
 0x13b   : > { %p691_p1 = scmp.ne.s32.totalorder %s980_s5, %s690_s22  ;;  %p695_p5 = scmp.lt.u32.totalorder %s980_s5, %s1036_s3 }
 0x13c   : > { %p696_p4 = scmp.lt.u32.totalorder %s694_s4, %s690_s22  ;;  %p698_p0 = scmp.lt.u32.totalorder %s690_s22, %s980_s5 }
 0x13d   : > { %p692_p6 = pnand %p691_p1, %p1047_p3 }
 0x13e   : > { %p697_p8 = por %p696_p4, %p695_p5 }
 0x13f   : > { %p693_p2 = pneg %p692_p6 }
 0x140   : > { %p699_p12 = por %p698_p0, %p697_p8 }
 0x142   : > { %p700_p13 = pnand %p699_p12, %p693_p2 }
 0x144   : > { %703 = shalt.err (!%p700_p13)
}
 0x145   : > { %s769_s10 = smov 128   ;;  %s770_s23 = smov 8  }
 0x146   : > { %549 = dma.vmem_to_hbm [thread:$0]  (%p1047_p3), %s982_s20, 256, %s980_s5, %s374_s6, %s769_s10, %s769_s10, %s770_s23  }
 0x147 PF: > { %s404_s11 = sand.u32 1, %s742_s12   ;;  %p1048_p7 = scmp.ne.s32.totalorder %s1042_s26, 0 }
 0x148   : > { %p1049_p10 = scmp.ge.s32.totalorder %s762_s2, 2  ;;  %s405_s21 = scalar_lea.sflag [#allocation5], %s404_s11 }
 0x14a   : > { %p559_p9 = pnand %p1049_p10, %p1048_p7 }
 0x14c   : > { %737 = dma.done.wait (!%p559_p9), %s405_s21, 256  }
 0x14d   : > { %739 = vsyncadd (!%p559_p9), %s405_s21, 4294967040  ;;  %s22_s2 = sadd.s32 1, %s762_s2   ;;  %s1050_s12 = smov %s746_s13 }
 0x14e   : > { %p19_p11 = scmp.ge.s32.totalorder %s22_s2, 4   ;;  %s1051_s13 = smov %s750_s14 }
 0x14f   : > { %s1052_s14 = smov %s847_s25  ;;  %s1053_s15 = smov %s758_s16 }
 0x150   : > { %s1054_s16 = smov %s1056_s19  ;;  %21 = sbr.rel (!%p19_p11) target bundleno = 8 (0x8), region = 102 }
 0x157   :  { %410 = vsyncpa [#allocation4], 1 }
 0x158   :  { %412 = vsyncpa [#allocation4 + $0x1], 1 }
 0x159   :  { %413 = vsyncpa [#allocation7], 1 }
 0x15a   :  { %415 = vsyncpa [#allocation7 + $0x1], 1 }
 0x15b   :  { %416 = vsyncpa [#allocation5], 1 }
 0x15c   :  { %418 = vsyncpa [#allocation5 + $0x1], 1 }

</bundles_post_ra>
